<compile_context>
chip_gen: v7x
topology: tpu7x:2x2x1
jax: 0.10.0
libtpu: 0.0.40
codegen_flags: <defaults>
</compile_context>

<pallas_src>
import functools

import jax
import jax.numpy as jnp
from jax.experimental import pallas as pl
from jax.experimental.pallas import tpu as pltpu


def _round_up(x, m):
    return (x + m - 1) // m * m


def _lut_gather_kernel(ids_ref, lut_t_ref, out_ref):
    # ids_ref  : (1, TILE)  int32  token ids for this row tile
    # lut_t_ref: (3, V)     f32    folded network LUT, channel-major (resident)
    # out_ref  : (3, TILE)  f32    out[c, t] = lut_t[c, ids[t]]
    ids = ids_ref[...]                                     # (1, TILE)
    v = lut_t_ref.shape[1]
    tile = ids.shape[1]
    vocab_iota = jax.lax.broadcasted_iota(jnp.int32, (v, tile), 0)
    onehot = (vocab_iota == ids).astype(jnp.float32)       # (V, TILE)
    # Exact gather: exactly one 1.0 per column, so the contraction picks the
    # matching LUT row with no rounding.
    out_ref[...] = jnp.dot(lut_t_ref[...], onehot,
                           preferred_element_type=jnp.float32)


@functools.partial(jax.jit, static_argnames=("tile_n",))
def evidence_encoder_forward(entrez, emb_table, w1, b1, w2, b2, *, tile_n=8192):
    """entrez: (B, S) int ids. Returns (_ag, _bg, _alpha_g), each (B, S, 1) f32.

    w1: (E, H), b1: (H,)  -- hidden_nn (stored transposed vs. torch: x @ W)
    w2: (H, 3), b2: (3,)  -- beta_nn
    """
    B, S = entrez.shape
    vocab, _E = emb_table.shape
    N = B * S

    # ---- Exact algebraic fold of embedder -> hidden_nn -> beta_nn -> relu
    #      -> +1e-10 into a (vocab, 3) LUT (valid: output depends only on the
    #      id and there is no activation between the two Linear layers). ----
    w_fused = jnp.dot(w1, w2, preferred_element_type=jnp.float32)        # (E, 3)
    b_fused = jnp.dot(b1, w2, preferred_element_type=jnp.float32) + b2   # (3,)
    lut = jnp.maximum(
        jnp.dot(emb_table, w_fused, preferred_element_type=jnp.float32)
        + b_fused, 0.0) + 1e-10                                          # (vocab, 3)
    lut_t = lut.T                                                        # (3, vocab)

    # ---- Token-axis tiling (tokens on the 128-lane axis, no partial blocks).
    n_tok = _round_up(N, 128)
    tile = min(int(tile_n), n_tok)
    if tile == n_tok and n_tok > 128:
        # Split into >= 2 grid steps so v7x's two TensorCores both get work.
        tile = _round_up(n_tok // 2, 128)
    n_pad = _round_up(n_tok, tile)

    ids = entrez.reshape(-1).astype(jnp.int32)
    if n_pad != N:
        ids = jnp.concatenate([ids, jnp.zeros((n_pad - N,), dtype=jnp.int32)])
    ids = ids.reshape(1, n_pad)

    grid = (n_pad // tile,)
    cost = pl.CostEstimate(
        flops=2 * n_pad * vocab * 3,
        transcendentals=0,
        bytes_accessed=n_pad * 4 + n_pad * 3 * 4 + vocab * 3 * 4,
    )

    out_t = pl.pallas_call(
        _lut_gather_kernel,
        out_shape=jax.ShapeDtypeStruct((3, n_pad), jnp.float32),
        grid_spec=pl.GridSpec(
            grid=grid,
            in_specs=[
                pl.BlockSpec((1, tile), lambda i: (0, i)),      # ids row tile
                pl.BlockSpec((3, vocab), lambda i: (0, 0)),     # resident LUT
            ],
            out_specs=pl.BlockSpec((3, tile), lambda i: (0, i)),
        ),
        compiler_params=pltpu.CompilerParams(
            dimension_semantics=("parallel",)),   # shard tiles over v7x's 2 TCs
        cost_estimate=cost,
    )(ids, lut_t)

    out_t = out_t[:, :N]                          # (3, N), drop padding
    _ag = out_t[0].reshape(B, S, 1)
    _bg = out_t[1].reshape(B, S, 1)
    _alpha_g = out_t[2].reshape(B, S, 1)
    return _ag, _bg, _alpha_g


def _init_linear(key, in_features, out_features):
    """Deterministic init mimicking torch.nn.Linear (uniform +/- 1/sqrt(fan_in)).
    Weight returned as (in_features, out_features) for x @ W."""
    kw, kb = jax.random.split(key)
    bound = 1.0 / jnp.sqrt(jnp.float32(in_features))
    w = jax.random.uniform(kw, (in_features, out_features), jnp.float32,
                           minval=-bound, maxval=bound)
    b = jax.random.uniform(kb, (out_features,), jnp.float32,
                           minval=-bound, maxval=bound)
    return w, b


if __name__ == "__main__":
    # Small, module-consistent shapes.
    vocab_size = 64            # number of entrez ids
    final_embedding_size = 32  # args.final_embedding_size
    hidden_size = 32           # args.hidden_size
    batch, seq = 2, 8

    key = jax.random.PRNGKey(0)
    k_emb, k_h, k_b, k_in = jax.random.split(key, 4)

    emb_table = jax.random.normal(k_emb, (vocab_size, final_embedding_size),
                                  jnp.float32) * 0.1
    w1, b1 = _init_linear(k_h, final_embedding_size, hidden_size)   # hidden_nn
    w2, b2 = _init_linear(k_b, hidden_size, 3)                      # beta_nn

    entrez = jax.random.randint(k_in, (batch, seq), 0, vocab_size, jnp.int32)

    _ag, _bg, _alpha_g = evidence_encoder_forward(
        entrez, emb_table, w1, b1, w2, b2)
    jax.block_until_ready((_ag, _bg, _alpha_g))

    # Pure-JAX reference: the original (unfused) two-matmul PyTorch path.
    # The kernel uses the algebraically folded LUT, so differences are at
    # fp32 rounding level — well within the tolerance below.
    x_ref = jnp.take(emb_table, entrez.reshape(-1), axis=0)
    h_ref = jnp.dot(x_ref, w1) + b1
    z_ref = (jnp.maximum(jnp.dot(h_ref, w2) + b2, 0.0) + 1e-10).reshape(
        batch, seq, 3)

    assert _ag.shape == (batch, seq, 1)
    assert _bg.shape == (batch, seq, 1)
    assert _alpha_g.shape == (batch, seq, 1)
    assert jnp.allclose(_ag[..., 0], z_ref[..., 0], atol=1e-5)
    assert jnp.allclose(_bg[..., 0], z_ref[..., 1], atol=1e-5)
    assert jnp.allclose(_alpha_g[..., 0], z_ref[..., 2], atol=1e-5)

    print("KERNEL_OK")
</pallas_src>

<mosaic_0001>
module attributes {stable_mosaic.version = 11 : i64} {
  func.func @_lut_gather_kernel(%arg0: i32, %arg1: memref<1x128xi32, #tpu.memory_space<vmem>>, %arg2: memref<3x64xf32, #tpu.memory_space<vmem>>, %arg3: memref<3x128xf32, #tpu.memory_space<vmem>>) attributes {dimension_semantics = [#tpu.dimension_semantics<parallel>], iteration_bounds = array<i64: 1>, scalar_prefetch = 0 : i64, scratch_operands = 0 : i64, tpu.core_type = #tpu.core_type<tc>, window_params = [{transform_indices = @transform_0, window_bounds = array<i64: 1, 128>}, {pipeline_mode = #tpu.pipeline_mode<synchronous>, transform_indices = @transform_1, window_bounds = array<i64: 3, 64>}, {transform_indices = @transform_2, window_bounds = array<i64: 3, 128>}]} {
    %c0 = arith.constant 0 : index
    %c0_0 = arith.constant 0 : index
    %0 = vector.load %arg1[%c0, %c0_0] : memref<1x128xi32, #tpu.memory_space<vmem>>, vector<1x128xi32>
    %1 = tpu.iota {dimensions = array<i32: 0>} : vector<64x128xi32>
    %2 = vector.broadcast %0 : vector<1x128xi32> to vector<64x128xi32>
    %3 = arith.cmpi eq, %1, %2 : vector<64x128xi32>
    %4 = arith.extui %3 : vector<64x128xi1> to vector<64x128xi32>
    %5 = arith.sitofp %4 : vector<64x128xi32> to vector<64x128xf32>
    %c0_1 = arith.constant 0 : index
    %c0_2 = arith.constant 0 : index
    %6 = vector.load %arg2[%c0_1, %c0_2] : memref<3x64xf32, #tpu.memory_space<vmem>>, vector<3x64xf32>
    %cst = arith.constant dense<0.000000e+00> : vector<3x128xf32>
    %7 = tpu.matmul %6, %5, %cst {dimension_numbers = #tpu.dot_dimension_numbers<[1], [0], [0], [1], [0, 0, 1, 1], [], []>} : vector<3x64xf32>, vector<64x128xf32>, vector<3x128xf32> -> vector<3x128xf32>
    %c0_3 = arith.constant 0 : index
    %c0_4 = arith.constant 0 : index
    %8 = vector.load %arg3[%c0_3, %c0_4] : memref<3x128xf32, #tpu.memory_space<vmem>>, vector<3x128xf32>
    tpu.vector_store %arg3[%c0_3, %c0_4], %7 {strides = array<i32>} : memref<3x128xf32, #tpu.memory_space<vmem>>, vector<3x128xf32>,
    return
  }
  func.func @transform_0(%arg0: i32) -> (i32, i32) {
    %c0_i32 = arith.constant 0 : i32
    %c0_i32_0 = arith.constant 0 : i32
    return %c0_i32, %arg0 : i32, i32
  }
  func.func @transform_1(%arg0: i32) -> (i32, i32) {
    %c0_i32 = arith.constant 0 : i32
    %c0_i32_0 = arith.constant 0 : i32
    %c0_i32_1 = arith.constant 0 : i32
    return %c0_i32, %c0_i32_0 : i32, i32
  }
  func.func @transform_2(%arg0: i32) -> (i32, i32) {
    %c0_i32 = arith.constant 0 : i32
    %c0_i32_0 = arith.constant 0 : i32
    return %c0_i32, %arg0 : i32, i32
  }
}

</mosaic_0001>

<bundles_post_ra>
// kernel: squeeze.5
= control target key start
LH: loop header
LB: loop body
LE: loop exit
PB: predicated region body
PF: predicated region fallthrough
CT: control target
= control target key end

     0   :  { %s85_s0 = inlined_call_operand.vmem [shape: f32[16], index: 0, kind: input, shape index: {}]   ;;  %s86_s1 = inlined_call_operand.hbm [shape: f32[2,8,1], index: 1, kind: output, shape index: {}]  }
   0x1   :  { %v5_v0 = vld [vmem:[%s85_s0] sm:$0x1] }
   0x2   :  { %2 = vsyncpa [#allocation1], 0  ;;  %6 = vst [vmem:[#allocation3] sm:$0x1] %v5_v0  ;;  %vm8_vm0 = vcmask 64512   ;;  %s58_s0 = smov 120  }
   0x3   :  { %s59_s8 = smov [#allocation0]  }
   0x4   :  { %s26_s9 = sshll.u32 %s59_s8, 4  ;;  %s27_s9 = int_to_ptr.vmem [resolvable:$true] %s26_s9 }
   0x5   :  { %s34_s10 = scalar_lea.vmem %s27_s9, 32  ;;  %p39_p1 = scmp.lt.s32.totalorder %s27_s9, %s27_s9 }
   0x6   :  { %p35_p0 = scmp.ne.s32.totalorder %s27_s9, %s34_s10  ;;  %p40_p2 = scmp.lt.s32.totalorder %s34_s10, %s34_s10 }
   0x8   :  { %p41_p3 = por %p40_p2, %p39_p1 }
   0x9   :  { %v10_v1 = vld [vmem:[#allocation3] sm:$0x1]  }
   0xa   :  { %v7_v2 = vld [vmem:[#allocation3] sm:$0x1]   ;;  %11 = vrot.lane.b32.xlu0 %v10_v1, %s58_s0  ;;  %p42_p4 = pnand %p41_p3, %p35_p0 }
   0xb   :  { %9 = vst.msk [vmem:[#allocation2] sm:$0x1] %vm8_vm0, %v7_v2  }
  0x7c   :  { %v12_v3 = vpop.permute.xlu0 %11  }
  0x7d   :  { %15 = vst.msk [vmem:[#allocation2 + $0x1] sm:$0x1] %vm8_vm0, %v12_v3  }
  0x84   :  { %v19_v4 = vld [vmem:[#allocation2] sm:$0x3] }
  0x85   :  { %21 = vst [vmem:[#allocation0] sm:$0x3] %v19_v4 }
  0x86   :  { %45 = shalt.err (!%p42_p4)
}
  0x87   :  { %s46_s13 = scalar_lea.hbm %s86_s1, 32 }
  0x88   :  { %p47_p5 = scmp.ne.s32.totalorder %s86_s1, %s46_s13  ;;  %p50_p6 = scmp.lt.u32.totalorder %s46_s13, %s86_s1 }
  0x8a   :  { %p52_p7 = pnand %p50_p6, %p47_p5 }
  0x8c   :  { %55 = shalt.err (!%p52_p7)
}
  0x8d   :  { %29 = dma.vmem_to_hbm [thread:$0]  %s27_s9, 32, %s86_s1, [#allocation1]  }
  0x8e   :  { %56 = dma.done.wait [#allocation1], 32  }
  0x8f   :  { %57 = vsyncadd [#allocation1], 4294967264 }
  0x90   :  { %31 = vsyncpa [#allocation1], 1 }

// kernel: evidence_encoder_forward.1
= control target key start
LH: loop header
LB: loop body
LE: loop exit
PB: predicated region body
PF: predicated region fallthrough
CT: control target
= control target key end

     0   :  { %v12_v0 = vlaneseq  ;;  %v191_v1 = vmov 0.0|0.0   ;;  %vm192_vm0 = vmmov 0   ;;  %v193_v4 = vmov 0.0   ;;  %s219_s0 = inlined_call_operand.vmem [shape: s32[1,128], index: 0, kind: input, shape index: {}]   ;;  %s220_s1 = inlined_call_operand.vmem [shape: f32[3,64], index: 1, kind: input, shape index: {}]   ;;  %s221_s2 = inlined_call_operand.vmem [shape: f32[3,128], index: 2, kind: output, shape index: {}]  }
   0x1   :  { %175 = vmatprep.subr.bf16.mxu0 %v191_v1  ;;  %v129_v2 = vld [vmem:[%s219_s0] ss:$0 sm:$0xff]  ;;  %172 = vmatprep.mubr.msk.f32.mxu0 %vm192_vm0, %v193_v4  ;;  %v194_v10 = vmov 1.0|1.0   ;;  %vm50_vm13 = vcmask 523264  }
   0x2   :  { %v13_v3 = vshrl.u32 %v12_v0, 7  ;;  %v49_v13 = vld [vmem:[%s220_s1] sm:$0x7] }
   0x4   :  { %v14_v5 = vadd.s32 8, %v13_v3  ;;  %vm25_vm1 = vcmp.eq.s32.totalorder %v13_v3, %v129_v2  ;;  %v15_v6 = vadd.s32 16, %v13_v3  ;;  %v16_v7 = vadd.s32 24, %v13_v3 }
   0x5   :  { %v17_v8 = vadd.s32 32, %v13_v3  ;;  %v18_v9 = vadd.s32 40, %v13_v3  ;;  %v19_v11 = vadd.s32 48, %v13_v3  ;;  %v20_v12 = vadd.s32 56, %v13_v3 }
   0x6   :  { %vm26_vm2 = vcmp.eq.s32.totalorder %v14_v5, %v129_v2  ;;  %vm27_vm3 = vcmp.eq.s32.totalorder %v15_v6, %v129_v2  ;;  %vm28_vm4 = vcmp.eq.s32.totalorder %v16_v7, %v129_v2 }
   0x7   :  { %vm176_vm5 = vmpackc.low %vm26_vm2, %vm25_vm1  ;;  %vm29_vm7 = vcmp.eq.s32.totalorder %v17_v8, %v129_v2  ;;  %vm30_vm8 = vcmp.eq.s32.totalorder %v18_v9, %v129_v2  ;;  %vm31_vm10 = vcmp.eq.s32.totalorder %v19_v11, %v129_v2  ;;  %vm32_vm11 = vcmp.eq.s32.totalorder %v20_v12, %v129_v2 }
   0x8   :  { %177 = vmatpush3.bf16.msk.msra.mxu0 %vm176_vm5, %v194_v10  ;;  %vm179_vm6 = vmpackc.low %vm28_vm4, %vm27_vm3 }
   0x9   :  { %178 = vmatprep.subr.bf16.mxu0 %v191_v1  ;;  %vm182_vm9 = vmpackc.low %vm30_vm8, %vm29_vm7 }
   0xa   :  { %vm185_vm12 = vmpackc.low %vm32_vm11, %vm31_vm10 }
   0xc   :  { %180 = vmatpush3.bf16.msk.msra.mxu0 %vm179_vm6, %v194_v10 }
   0xd   :  { %181 = vmatprep.subr.bf16.mxu0 %v191_v1 }
  0x10   :  { %183 = vmatpush3.bf16.msk.msra.mxu0 %vm182_vm9, %v194_v10 }
  0x11   :  { %184 = vmatprep.subr.bf16.mxu0 %v191_v1 }
  0x14   :  { %186 = vmatpush3.bf16.msk.msra.mxu0 %vm185_vm12, %v194_v10 }
  0x17   :  { %173 = vmatmul.mubr.msk.f32.vlgmr.msra.gmra.mrb[0].mxu0 %vm50_vm13, %v49_v13 }
  0xea   :  { %v120_v14 = vpop.f32.mrb[0].mxu0 }
  0xeb   :  { %124 = vst [vmem:[%s221_s2] sm:$0x7] %v120_v14  ;;  %v174_v15 = vpop.f32.mrb[1].mxu0 }

</bundles_post_ra>
